<compile_context>
chip_gen: v7x
topology: tpu7x:2x2x1
jax: 0.10.0
libtpu: 0.0.40
codegen_flags: <defaults>
</compile_context>

<pallas_src>
import jax
import jax.numpy as jnp
from jax.experimental import pallas as pl
from jax.experimental.pallas import tpu as pltpu

INPUT_SIZE = 2
HIDDEN_LAYERS = [10, 5]
OUTPUT_SIZE = 1

LANE = 128      # batch-tile quantum (lane width)
IN_P = 8        # input feature rows in HBM   (2 -> 8, one f32 sublane group)
H1_P = 16       # hidden-1 rows inside VMEM   (10 -> 16)
H2_P = 8        # hidden-2 rows inside VMEM   (5 -> 8)
TB_MAX = 4096   # max batch tile (multiple of 128)


def _round_up(n, m):
    return ((n + m - 1) // m) * m


def _pad2d(a, rows, cols):
    r, c = a.shape
    return jnp.pad(a, ((0, rows - r), (0, cols - c)))


def mlp_kernel(xt_ref, w1t_ref, b1_ref, w2t_ref, b2_ref, w3t_ref, b3_ref, ot_ref):
    # hidden layer 1: (16, 8) @ (8, TB) -> (16, TB); batch on lanes.
    h = jnp.dot(w1t_ref[...], xt_ref[...],
                preferred_element_type=jnp.float32) + b1_ref[...]
    h = jax.nn.sigmoid(h)   # padded rows give sigmoid(0)=0.5; zero W2^T cols neutralize them
    # hidden layer 2: (8, 16) @ (16, TB) -> (8, TB).
    h = jnp.dot(w2t_ref[...], h,
                preferred_element_type=jnp.float32) + b2_ref[...]
    h = jax.nn.sigmoid(h)   # EUP cost is now tiny (8/16 sublanes, not 128 lanes)
    # output layer: (8, 8) @ (8, TB) -> (8, TB); only row 0 is the real output.
    o = jnp.dot(w3t_ref[...], h, preferred_element_type=jnp.float32)
    ot_ref[...] = o[0:1, :] + b3_ref[...]


@jax.jit
def mlp_forward(x, params):
    """x: [B, 2] float32.  params: list of (W [in,out], b [out]) per layer."""
    B = x.shape[0]
    B_pad = _round_up(max(B, 1), LANE)   # pad only the batch remainder

    # Batch tile: as large as useful; keep >= 2 grid steps when possible so
    # dimension_semantics=("parallel",) can shard across both v7x TensorCores.
    tb = min(TB_MAX, B_pad)
    if B_pad >= 2 * LANE:
        tb = min(tb, _round_up((B_pad + 1) // 2, LANE))
    grid = (pl.cdiv(B_pad, tb),)

    # Feature-major input: (8, B_pad), rows 2..7 zero (keeps MXU K-dim aligned
    # and makes padded contributions exactly zero).
    xt = _pad2d(jnp.transpose(x.astype(jnp.float32)), IN_P, B_pad)

    (w1, b1), (w2, b2), (w3, b3) = params
    w1t = _pad2d(jnp.transpose(w1.astype(jnp.float32)), H1_P, IN_P)    # (16, 8)
    b1p = jnp.pad(b1.astype(jnp.float32), (0, H1_P - b1.shape[0])).reshape(H1_P, 1)
    w2t = _pad2d(jnp.transpose(w2.astype(jnp.float32)), H2_P, H1_P)    # (8, 16)
    b2p = jnp.pad(b2.astype(jnp.float32), (0, H2_P - b2.shape[0])).reshape(H2_P, 1)
    w3t = _pad2d(jnp.transpose(w3.astype(jnp.float32)), H2_P, H2_P)    # (8, 8)
    b3p = b3.astype(jnp.float32).reshape(1, 1)

    out_t = pl.pallas_call(
        mlp_kernel,
        out_shape=jax.ShapeDtypeStruct((1, B_pad), jnp.float32),
        grid_spec=pltpu.PrefetchScalarGridSpec(
            num_scalar_prefetch=0,
            grid=grid,
            in_specs=[
                pl.BlockSpec((IN_P, tb), lambda i: (0, i)),    # x^T tile
                pl.BlockSpec((H1_P, IN_P), lambda i: (0, 0)),  # W1^T (resident)
                pl.BlockSpec((H1_P, 1), lambda i: (0, 0)),     # b1
                pl.BlockSpec((H2_P, H1_P), lambda i: (0, 0)),  # W2^T
                pl.BlockSpec((H2_P, 1), lambda i: (0, 0)),     # b2
                pl.BlockSpec((H2_P, H2_P), lambda i: (0, 0)),  # W3^T
                pl.BlockSpec((1, 1), lambda i: (0, 0)),        # b3
            ],
            out_specs=pl.BlockSpec((1, tb), lambda i: (0, i)),
        ),
        compiler_params=pltpu.CompilerParams(
            dimension_semantics=("parallel",)),
    )(xt, w1t, b1p, w2t, b2p, w3t, b3p)

    # Slice valid batch and return torch-style (B, 1).
    return out_t[0, :B][:, None]


def init_params(key):
    """Deterministic init mimicking torch.nn.Linear default (U[-1/sqrt(in), 1/sqrt(in)])."""
    dims = [INPUT_SIZE] + HIDDEN_LAYERS + [OUTPUT_SIZE]
    params = []
    for in_d, out_d in zip(dims[:-1], dims[1:]):
        key, kw, kb = jax.random.split(key, 3)
        bound = 1.0 / (in_d ** 0.5)
        W = jax.random.uniform(kw, (in_d, out_d), jnp.float32, -bound, bound)
        b = jax.random.uniform(kb, (out_d,), jnp.float32, -bound, bound)
        params.append((W, b))
    return params


def mlp_reference(x, params):
    h = x
    n = len(params)
    for i, (W, b) in enumerate(params):
        h = h @ W + b
        if i < n - 1:
            h = jax.nn.sigmoid(h)
    return h


if __name__ == "__main__":
    key = jax.random.PRNGKey(0)
    key, kx = jax.random.split(key)

    params = init_params(key)

    # Small deterministic example (matches the module's 2-feature input).
    batch = 8
    x = jax.random.normal(kx, (batch, INPUT_SIZE), jnp.float32)
    out = mlp_forward(x, params)
    jax.block_until_ready(out)
    ref = mlp_reference(x, params)
    assert out.shape == (batch, OUTPUT_SIZE), out.shape
    assert jnp.allclose(out, ref, atol=1e-5, rtol=1e-5), (out, ref)

    # Larger, awkward batch: multi-step grid + a partial (clipped) last tile.
    key, kx2 = jax.random.split(key)
    xb = jax.random.normal(kx2, (1333, INPUT_SIZE), jnp.float32)
    outb = mlp_forward(xb, params)
    jax.block_until_ready(outb)
    refb = mlp_reference(xb, params)
    assert outb.shape == (1333, OUTPUT_SIZE), outb.shape
    assert jnp.allclose(outb, refb, atol=1e-5, rtol=1e-5)

    print("KERNEL_OK")
</pallas_src>

<mosaic_0001>
module attributes {stable_mosaic.version = 11 : i64} {
  func.func @mlp_kernel(%arg0: i32, %arg1: memref<8x128xf32, #tpu.memory_space<vmem>>, %arg2: memref<16x8xf32, #tpu.memory_space<vmem>>, %arg3: memref<16x1xf32, #tpu.memory_space<vmem>>, %arg4: memref<8x16xf32, #tpu.memory_space<vmem>>, %arg5: memref<8x1xf32, #tpu.memory_space<vmem>>, %arg6: memref<8x8xf32, #tpu.memory_space<vmem>>, %arg7: memref<1x1xf32, #tpu.memory_space<vmem>>, %arg8: memref<1x128xf32, #tpu.memory_space<vmem>>) attributes {dimension_semantics = [#tpu.dimension_semantics<parallel>], iteration_bounds = array<i64: 1>, scalar_prefetch = 0 : i64, scratch_operands = 0 : i64, tpu.core_type = #tpu.core_type<tc>, window_params = [{transform_indices = @transform_0, window_bounds = array<i64: 8, 128>}, {pipeline_mode = #tpu.pipeline_mode<synchronous>, transform_indices = @transform_1, window_bounds = array<i64: 16, 8>}, {pipeline_mode = #tpu.pipeline_mode<synchronous>, transform_indices = @transform_2, window_bounds = array<i64: 16, 1>}, {pipeline_mode = #tpu.pipeline_mode<synchronous>, transform_indices = @transform_3, window_bounds = array<i64: 8, 16>}, {pipeline_mode = #tpu.pipeline_mode<synchronous>, transform_indices = @transform_4, window_bounds = array<i64: 8, 1>}, {pipeline_mode = #tpu.pipeline_mode<synchronous>, transform_indices = @transform_5, window_bounds = array<i64: 8, 8>}, {pipeline_mode = #tpu.pipeline_mode<synchronous>, transform_indices = @transform_6, window_bounds = array<i64: 1, 1>}, {transform_indices = @transform_7, window_bounds = array<i64: 1, 128>}]} {
    %c0 = arith.constant 0 : index
    %c0_0 = arith.constant 0 : index
    %0 = vector.load %arg2[%c0, %c0_0] : memref<16x8xf32, #tpu.memory_space<vmem>>, vector<16x8xf32>
    %c0_1 = arith.constant 0 : index
    %c0_2 = arith.constant 0 : index
    %1 = vector.load %arg1[%c0_1, %c0_2] : memref<8x128xf32, #tpu.memory_space<vmem>>, vector<8x128xf32>
    %cst = arith.constant dense<0.000000e+00> : vector<16x128xf32>
    %2 = tpu.matmul %0, %1, %cst {dimension_numbers = #tpu.dot_dimension_numbers<[1], [0], [0], [1], [0, 0, 1, 1], [], []>} : vector<16x8xf32>, vector<8x128xf32>, vector<16x128xf32> -> vector<16x128xf32>
    %c0_3 = arith.constant 0 : index
    %c0_4 = arith.constant 0 : index
    %3 = vector.load %arg3[%c0_3, %c0_4] : memref<16x1xf32, #tpu.memory_space<vmem>>, vector<16x1xf32>
    %4 = vector.broadcast %3 : vector<16x1xf32> to vector<16x128xf32>
    %5 = arith.addf %2, %4 : vector<16x128xf32>
    %6 = arith.negf %5 : vector<16x128xf32>
    %7 = math.exp %6 : vector<16x128xf32>
    %cst_5 = arith.constant 1.000000e+00 : f32
    %8 = vector.broadcast %cst_5 : f32 to vector<16x128xf32>
    %9 = arith.addf %8, %7 : vector<16x128xf32>
    %10 = arith.divf %8, %9 : vector<16x128xf32>
    %c0_6 = arith.constant 0 : index
    %c0_7 = arith.constant 0 : index
    %11 = vector.load %arg4[%c0_6, %c0_7] : memref<8x16xf32, #tpu.memory_space<vmem>>, vector<8x16xf32>
    %cst_8 = arith.constant dense<0.000000e+00> : vector<8x128xf32>
    %12 = tpu.matmul %11, %10, %cst_8 {dimension_numbers = #tpu.dot_dimension_numbers<[1], [0], [0], [1], [0, 0, 1, 1], [], []>} : vector<8x16xf32>, vector<16x128xf32>, vector<8x128xf32> -> vector<8x128xf32>
    %c0_9 = arith.constant 0 : index
    %c0_10 = arith.constant 0 : index
    %13 = vector.load %arg5[%c0_9, %c0_10] : memref<8x1xf32, #tpu.memory_space<vmem>>, vector<8x1xf32>
    %14 = vector.broadcast %13 : vector<8x1xf32> to vector<8x128xf32>
    %15 = arith.addf %12, %14 : vector<8x128xf32>
    %16 = arith.negf %15 : vector<8x128xf32>
    %17 = math.exp %16 : vector<8x128xf32>
    %cst_11 = arith.constant 1.000000e+00 : f32
    %18 = vector.broadcast %cst_11 : f32 to vector<8x128xf32>
    %19 = arith.addf %18, %17 : vector<8x128xf32>
    %20 = arith.divf %18, %19 : vector<8x128xf32>
    %c0_12 = arith.constant 0 : index
    %c0_13 = arith.constant 0 : index
    %21 = vector.load %arg6[%c0_12, %c0_13] : memref<8x8xf32, #tpu.memory_space<vmem>>, vector<8x8xf32>
    %cst_14 = arith.constant dense<0.000000e+00> : vector<8x128xf32>
    %22 = tpu.matmul %21, %20, %cst_14 {dimension_numbers = #tpu.dot_dimension_numbers<[1], [0], [0], [1], [0, 0, 1, 1], [], []>} : vector<8x8xf32>, vector<8x128xf32>, vector<8x128xf32> -> vector<8x128xf32>
    %23 = vector.extract_strided_slice %22 {offsets = [0, 0], sizes = [1, 128], strides = [1, 1]} : vector<8x128xf32> to vector<1x128xf32>
    %c0_15 = arith.constant 0 : index
    %c0_16 = arith.constant 0 : index
    %24 = vector.load %arg7[%c0_15, %c0_16] : memref<1x1xf32, #tpu.memory_space<vmem>>, vector<1x1xf32>
    %25 = vector.broadcast %24 : vector<1x1xf32> to vector<1x128xf32>
    %26 = arith.addf %23, %25 : vector<1x128xf32>
    %c0_17 = arith.constant 0 : index
    %c0_18 = arith.constant 0 : index
    %27 = vector.load %arg8[%c0_17, %c0_18] : memref<1x128xf32, #tpu.memory_space<vmem>>, vector<1x128xf32>
    tpu.vector_store %arg8[%c0_17, %c0_18], %26 {strides = array<i32>} : memref<1x128xf32, #tpu.memory_space<vmem>>, vector<1x128xf32>,
    return
  }
  func.func @transform_0(%arg0: i32) -> (i32, i32) {
    %c0_i32 = arith.constant 0 : i32
    %c0_i32_0 = arith.constant 0 : i32
    return %c0_i32, %arg0 : i32, i32
  }
  func.func @transform_1(%arg0: i32) -> (i32, i32) {
    %c0_i32 = arith.constant 0 : i32
    %c0_i32_0 = arith.constant 0 : i32
    %c0_i32_1 = arith.constant 0 : i32
    return %c0_i32, %c0_i32_0 : i32, i32
  }
  func.func @transform_2(%arg0: i32) -> (i32, i32) {
    %c0_i32 = arith.constant 0 : i32
    %c0_i32_0 = arith.constant 0 : i32
    %c0_i32_1 = arith.constant 0 : i32
    return %c0_i32, %c0_i32_0 : i32, i32
  }
  func.func @transform_3(%arg0: i32) -> (i32, i32) {
    %c0_i32 = arith.constant 0 : i32
    %c0_i32_0 = arith.constant 0 : i32
    %c0_i32_1 = arith.constant 0 : i32
    return %c0_i32, %c0_i32_0 : i32, i32
  }
  func.func @transform_4(%arg0: i32) -> (i32, i32) {
    %c0_i32 = arith.constant 0 : i32
    %c0_i32_0 = arith.constant 0 : i32
    %c0_i32_1 = arith.constant 0 : i32
    return %c0_i32, %c0_i32_0 : i32, i32
  }
  func.func @transform_5(%arg0: i32) -> (i32, i32) {
    %c0_i32 = arith.constant 0 : i32
    %c0_i32_0 = arith.constant 0 : i32
    %c0_i32_1 = arith.constant 0 : i32
    return %c0_i32, %c0_i32_0 : i32, i32
  }
  func.func @transform_6(%arg0: i32) -> (i32, i32) {
    %c0_i32 = arith.constant 0 : i32
    %c0_i32_0 = arith.constant 0 : i32
    %c0_i32_1 = arith.constant 0 : i32
    return %c0_i32, %c0_i32_0 : i32, i32
  }
  func.func @transform_7(%arg0: i32) -> (i32, i32) {
    %c0_i32 = arith.constant 0 : i32
    %c0_i32_0 = arith.constant 0 : i32
    return %c0_i32, %arg0 : i32, i32
  }
}

</mosaic_0001>

<bundles_post_ra>
// kernel: mlp_forward.1
= control target key start
LH: loop header
LB: loop body
LE: loop exit
PB: predicated region body
PF: predicated region fallthrough
CT: control target
= control target key end

     0   :  { %vm43_vm0 = vcmask 64512   ;;  %v367_v3 = vmov 0   ;;  %v368_v6 = vmov 0.0|0.0   ;;  %vm369_vm1 = vmmov 0   ;;  %s444_s0 = inlined_call_operand.vmem [shape: f32[8,128], index: 0, kind: input, shape index: {}]   ;;  %s445_s1 = inlined_call_operand.vmem [shape: f32[16,8], index: 1, kind: input, shape index: {}]   ;;  %s446_s2 = inlined_call_operand.vmem [shape: f32[16,1], index: 2, kind: input, shape index: {}]   ;;  %s447_s4 = inlined_call_operand.vmem [shape: f32[8,1], index: 4, kind: input, shape index: {}]   ;;  %s448_s6 = inlined_call_operand.<no memory space> [shape: f32[1,1], index: 6, kind: input, shape index: {}]   ;;  %s449_s3 = inlined_call_operand.vmem [shape: f32[8,16], index: 3, kind: input, shape index: {}]   ;;  %s450_s5 = inlined_call_operand.vmem [shape: f32[8,8], index: 5, kind: input, shape index: {}]   ;;  %s451_s7 = inlined_call_operand.vmem [shape: f32[1,128], index: 7, kind: output, shape index: {}]  }
   0x1   :  { %v30_v0 = vld [vmem:[%s444_s0] sm:$0xff]  ;;  %v29_v2 = vld [vmem:[%s445_s1 + $0x8] sm:$0xff]  ;;  %353 = vset.pattern.permute.xlu0 %v367_v3  ;;  %354 = vset.pattern.permute.xlu1 %v367_v3  ;;  %v370_v7 = vmov 0.0   ;;  %v12_v9 = vstv %s448_s6  ;;  %vm144_vm2 = vcmask 130048   ;;  %v304_v36 = vlaneseq }
   0x2   :  { %v28_v1 = vld [vmem:[%s445_s1] sm:$0xff]  ;;  %329 = vmatprep.subr.mxu0 %v30_v0  ;;  %v32_v5 = vld [vmem:[%s446_s2 + $0x8] sm:$0xff]  ;;  %346 = vmatprep.subr.bf16.mxu1 %v368_v6  ;;  %13 = vst [vmem:[#allocation2] sm:$0x1] %v12_v9 }
   0x3   :  { %331 = vmatprep.mubr.msk.f32.mxu0 %vm43_vm0, %v28_v1  ;;  %v31_v4 = vld [vmem:[%s446_s2] sm:$0xff]  ;;  %330 = vmatpush3.msra.mxu0 %v30_v0  ;;  %v305_v37 = vshrl.u32 %v304_v36, 7 }
   0x4   :  { %35 = vperm.xlu0 %353, %v31_v4   ;;  %332 = vmatmul.mubr.msk.f32.vlgmr.msra.gmra.mrb[0].mxu0 %vm43_vm0, %v29_v2  ;;  %v138_v8 = vld [vmem:[%s447_s4] sm:$0xff] }
   0x5   :  { %338 = vmatprep.mubr.msk.f32.mxu1 %vm369_vm1, %v370_v7  ;;  %341 = vmatprep.subr.mxu0 %v370_v7  ;;  %v137_v26 = vld [vmem:[%s449_s3] sm:$0xff]  ;;  %v306_v38 = vsub.s32 0, %v305_v37 }
   0x6   :  { %343 = vmatprep.mubr.msk.f32.mxu0 %vm369_vm1, %v370_v7  ;;  %141 = vperm.xlu1 %354, %v138_v8   ;;  %v224_v34 = vld [vmem:[%s450_s5] sm:$0xff] }
   0x8   :  { %40 = vperm.xlu0 %353, %v32_v5  }
   0x9   :  { %v298_v10 = vld [vmem:[#allocation2] sm:$0x1] }
   0xa   :  { %301 = vperm.xlu1 %354, %v298_v10  }
  0x83   :  { %v36_v11 = vpop.permute.xlu0 %35 }
  0x85   :  { %v142_v27 = vpop.permute.xlu1 %141 }
  0x87   :  { %v41_v12 = vpop.permute.xlu0 %40 }
  0x89   :  { %v302_v39 = vpop.permute.xlu1 %301 }
  0x8a   :  { %v307_v40 = vrot.slane %v302_v39, %v306_v38 }
  0xd7   :  { %v333_v13 = vpop.f32.mrb[0].mxu0 }
  0xd8   :  { %v122_v14 = vadd.f32 %v333_v13, %v41_v12  ;;  %v116_v15 = vpop.f32.mrb[1].mxu0 }
  0xd9   :  { %v117_v16 = vadd.f32 %v116_v15, %v36_v11 }
  0xda   :  { %v317_v17 = vmul.f32 -1.442695, %v122_v14 }
  0xdb   :  { %v316_v18 = vmul.f32 -1.442695, %v117_v16 }
  0xdc   :  { %355 = vpow2.f32 %v317_v17 }
  0xdd   :  { %357 = vpow2.f32 %v316_v18 }
  0xe6   :  { %v356_v19 = vpop.eup %355 }
  0xe7   :  { %v358_v20 = vpop.eup %357  ;;  %v132_v21 = vadd.f32 1.0, %v356_v19 }
  0xe8   :  { %v131_v22 = vadd.f32 1.0, %v358_v20 }
  0xe9   :  { %359 = vrcp.f32 %v132_v21 }
  0xea   :  { %361 = vrcp.f32 %v131_v22 }
  0xf3   :  { %v360_v23 = vpop.eup %359 }
  0xf4   :  { %v362_v24 = vpop.eup %361 }
  0xf5   :  { %v347_v25 = vpack.c.bf16 %v360_v23, %v362_v24 }
  0xf7   :  { %348 = vmatpush3.bf16.msra.mxu1 %v347_v25 }
  0xfa   :  { %339 = vmatmul.mubr.msk.f32.vlgmr.msra.gmra.mrb[0].mxu1 %vm144_vm2, %v137_v26 }
 0x1cd   :  { %v214_v28 = vpop.f32.mrb[0].mxu1 }
 0x1ce   :  { %v215_v29 = vadd.f32 %v214_v28, %v142_v27  ;;  %v340_v30 = vpop.f32.mrb[1].mxu1 }
 0x1d0   :  { %v319_v31 = vmul.f32 -1.442695, %v215_v29 }
 0x1d2   :  { %363 = vpow2.f32 %v319_v31 }
 0x1dc   :  { %v364_v32 = vpop.eup %363 }
 0x1dd   :  { %v221_v33 = vadd.f32 1.0, %v364_v32 }
 0x1df   :  { %365 = vrcp.f32 %v221_v33 }
 0x1e9   :  { %v366_v35 = vpop.eup %365 }
 0x1ea   :  { %342 = vmatpush3.msra.mxu0 %v366_v35 }
 0x1eb   :  { %344 = vmatmul.mubr.msk.f32.vlgmr.msra.gmra.mrb[2].mxu0 %vm43_vm0, %v224_v34 }
 0x2be   :  { %v294_v41 = vpop.f32.mrb[2].mxu0 }
 0x2bf   :  { %v308_v42 = vadd.f32 %v307_v40, %v294_v41  ;;  %v345_v43 = vpop.f32.mrb[3].mxu0 }
 0x2c1   :  { %309 = vst [vmem:[%s451_s7] sm:$0x1] %v308_v42 }

</bundles_post_ra>
